<compile_context>
chip_gen: v7x
topology: tpu7x:2x2x1
jax: 0.10.0
libtpu: 0.0.40
codegen_flags: <defaults>
</compile_context>

<pallas_src>
import jax
import jax.numpy as jnp
from jax.experimental import pallas as pl
from jax.experimental.pallas import tpu as pltpu

LN_EPS = 1e-5  # nn.LayerNorm default


def adapter_kernel(x_ref, gamma_ref, beta_ref, wd_ref, bd_ref, wu_ref, bu_ref,
                   out_ref):
    # ---- LayerNorm ('in' option) over the last dim, statistics in f32 ----
    x = x_ref[...].astype(jnp.float32)                        # (bm, D)
    mean = jnp.mean(x, axis=-1, keepdims=True)
    xc = x - mean
    var = jnp.mean(xc * xc, axis=-1, keepdims=True)
    xn = xc * jax.lax.rsqrt(var + LN_EPS)
    xn = xn * gamma_ref[...] + beta_ref[...]                   # (1, D) broadcast

    # ---- down_proj + ReLU (f32 operands, f32 MXU accumulate) ----
    down = jnp.dot(xn, wd_ref[...], preferred_element_type=jnp.float32)
    down = jnp.maximum(down + bd_ref[...], 0.0)
    # dropout(p=0.0) -> identity

    # ---- up_proj ----
    up = jnp.dot(down, wu_ref[...], preferred_element_type=jnp.float32)
    up = up + bu_ref[...]                                      # (bm, D)

    # add_residual=False -> output is just `up` (scale returned, not applied).
    out_ref[...] = up.astype(out_ref.dtype)


def _round_up(x, m):
    return (x + m - 1) // m * m


def _vmem_capacity_bytes():
    """Physical per-core VMEM (128 MiB on v5e/v6e, 64 MiB per TC on v7x)."""
    try:
        return int(pltpu.get_tpu_info().vmem_capacity_bytes)
    except Exception:  # hardware-query fallback only; never guards compilation
        return 64 * 1024 * 1024


def adapter_forward(x, params, *, block_rows=1024):
    """x: (B, N, D) float32. Returns (output (B, N, D), scale (1,) buffer)."""
    B, N, D = x.shape
    M = B * N
    down_size = params["wd"].shape[1]

    vmem_cap = _vmem_capacity_bytes()
    vmem_budget = (3 * vmem_cap) // 4           # ~96 MiB v5e/v6e, ~48 MiB v7x

    # ---- row tile: big (amortize per-step overhead), multiple of 16, <= M ----
    bm = min(_round_up(block_rows, 16), max(16, (M // 16) * 16))

    # v7x has 2 TensorCores; keep >= 2 steps on the "parallel" grid axis.
    if vmem_cap <= 64 * 1024 * 1024:
        bm = min(bm, max(16, _round_up(pl.cdiv(M, 2), 16)))

    def _vmem_need(bm_):
        io = 2 * 2 * bm_ * D * 4                            # x + out, double-buffered f32
        inter = 4 * bm_ * D * 4 + 2 * bm_ * down_size * 4   # f32 temporaries / spill room
        consts = 2 * (2 * D * down_size * 4 + (3 * D + down_size) * 4)
        return io + inter + consts

    while _vmem_need(bm) > vmem_budget and bm > 16:
        bm = max(16, _round_up(bm // 2, 16))

    grid = (pl.cdiv(M, bm),)                    # ragged last block handled by Pallas
    vmem_limit = int(min(vmem_budget,
                         max(32 * 1024 * 1024, int(_vmem_need(bm) * 1.3))))

    def cspec(shape):
        # Constant block index -> fetched once, resident across the whole grid.
        return pl.BlockSpec(shape, lambda i: (0, 0))

    kernel = pl.pallas_call(
        adapter_kernel,
        out_shape=jax.ShapeDtypeStruct((M, D), x.dtype),
        grid_spec=pltpu.PrefetchScalarGridSpec(
            num_scalar_prefetch=0,
            grid=grid,
            in_specs=[
                pl.BlockSpec((bm, D), lambda i: (i, 0)),    # x row tile
                cspec((1, D)),                              # LN gamma
                cspec((1, D)),                              # LN beta
                cspec((D, down_size)),                      # W_down (in, out)
                cspec((1, down_size)),                      # b_down
                cspec((down_size, D)),                      # W_up (in, out)
                cspec((1, D)),                              # b_up
            ],
            out_specs=pl.BlockSpec((bm, D), lambda i: (i, 0)),
        ),
        compiler_params=pltpu.CompilerParams(
            dimension_semantics=("parallel",),
            vmem_limit_bytes=vmem_limit,
        ),
    )

    out = kernel(x.reshape(M, D), params["gamma"], params["beta"],
                 params["wd"], params["bd"], params["wu"], params["bu"])
    return out.reshape(B, N, D), params["scale"]


def init_params(key, d_model, down_size, adapter_scalar=0.5):
    """Deterministic synthetic init mirroring the module's parameter shapes."""
    k1, k2, k3, k4 = jax.random.split(key, 4)
    # nn.LayerNorm(d_model): weight=ones, bias=zeros
    gamma = jnp.ones((1, d_model), jnp.float32)
    beta = jnp.zeros((1, d_model), jnp.float32)
    # nn.Linear stores weight as (out, in); we keep the transposed (in, out)
    # form so the kernel computes y = x @ W + b directly on the MXU.
    wd = jax.random.normal(k1, (d_model, down_size), jnp.float32) * 0.02
    bd = jax.random.normal(k2, (1, down_size), jnp.float32) * 0.02
    wu = jax.random.normal(k3, (down_size, d_model), jnp.float32) * 0.02
    bu = jax.random.normal(k4, (1, d_model), jnp.float32) * 0.02
    scale = jnp.ones((1,), jnp.float32) * adapter_scalar      # registered buffer
    return dict(gamma=gamma, beta=beta, wd=wd, bd=bd, wu=wu, bu=bu, scale=scale)


def adapter_ref(x, params):
    """Pure-JAX reference of the same forward pass (f32)."""
    mean = jnp.mean(x, axis=-1, keepdims=True)
    var = jnp.mean((x - mean) ** 2, axis=-1, keepdims=True)
    xn = (x - mean) * jax.lax.rsqrt(var + LN_EPS)
    xn = xn * params["gamma"][0] + params["beta"][0]
    down = jnp.maximum(jnp.dot(xn, params["wd"]) + params["bd"][0], 0.0)
    up = jnp.dot(down, params["wu"]) + params["bu"][0]
    return up


if __name__ == "__main__":
    key = jax.random.PRNGKey(0)
    kx, kp, kx2 = jax.random.split(key, 3)

    # Small demo shapes: d_model multiple of 128 (lane-dense stores),
    # down_size=64 is the module default.
    B, N, D, DOWN = 2, 8, 256, 64
    params = init_params(kp, D, DOWN, adapter_scalar=0.5)

    x = jax.random.normal(kx, (B, N, D), jnp.float32)
    out, scale = adapter_forward(x, params)
    out = jax.block_until_ready(out)
    ref = adapter_ref(x, params)
    assert out.shape == (B, N, D)
    assert jnp.allclose(out, ref, atol=1e-2, rtol=1e-2), "mismatch vs reference"
    assert float(scale[0]) == 0.5

    # Second case: B*N not a multiple of the row tile -> exercises the ragged
    # last block (no wrapper-side padding or slicing anywhere).
    B2, N2 = 3, 7
    x2 = jax.random.normal(kx2, (B2, N2, D), jnp.float32)
    out2, _ = adapter_forward(x2, params)
    out2 = jax.block_until_ready(out2)
    ref2 = adapter_ref(x2, params)
    assert out2.shape == (B2, N2, D)
    assert jnp.allclose(out2, ref2, atol=1e-2, rtol=1e-2), "ragged-block mismatch"

    print("KERNEL_OK")
</pallas_src>

<mosaic_0001>
module attributes {stable_mosaic.version = 11 : i64} {
  func.func @adapter_kernel(%arg0: i32, %arg1: memref<16x256xf32, #tpu.memory_space<vmem>>, %arg2: memref<1x256xf32, #tpu.memory_space<vmem>>, %arg3: memref<1x256xf32, #tpu.memory_space<vmem>>, %arg4: memref<256x64xf32, #tpu.memory_space<vmem>>, %arg5: memref<1x64xf32, #tpu.memory_space<vmem>>, %arg6: memref<64x256xf32, #tpu.memory_space<vmem>>, %arg7: memref<1x256xf32, #tpu.memory_space<vmem>>, %arg8: memref<16x256xf32, #tpu.memory_space<vmem>>) attributes {dimension_semantics = [#tpu.dimension_semantics<parallel>], iteration_bounds = array<i64: 1>, scalar_prefetch = 0 : i64, scratch_operands = 0 : i64, tpu.core_type = #tpu.core_type<tc>, window_params = [{transform_indices = @transform_0, window_bounds = array<i64: 16, 256>}, {pipeline_mode = #tpu.pipeline_mode<synchronous>, transform_indices = @transform_1, window_bounds = array<i64: 1, 256>}, {pipeline_mode = #tpu.pipeline_mode<synchronous>, transform_indices = @transform_2, window_bounds = array<i64: 1, 256>}, {pipeline_mode = #tpu.pipeline_mode<synchronous>, transform_indices = @transform_3, window_bounds = array<i64: 256, 64>}, {pipeline_mode = #tpu.pipeline_mode<synchronous>, transform_indices = @transform_4, window_bounds = array<i64: 1, 64>}, {pipeline_mode = #tpu.pipeline_mode<synchronous>, transform_indices = @transform_5, window_bounds = array<i64: 64, 256>}, {pipeline_mode = #tpu.pipeline_mode<synchronous>, transform_indices = @transform_6, window_bounds = array<i64: 1, 256>}, {transform_indices = @transform_7, window_bounds = array<i64: 16, 256>}]} {
    %c0 = arith.constant 0 : index
    %c0_0 = arith.constant 0 : index
    %0 = vector.load %arg1[%c0, %c0_0] : memref<16x256xf32, #tpu.memory_space<vmem>>, vector<16x256xf32>
    %cst = arith.constant dense<0.000000e+00> : vector<16xf32>
    %1 = vector.multi_reduction <add>, %0, %cst [1] : vector<16x256xf32> to vector<16xf32>
    %2 = vector.shape_cast %1 : vector<16xf32> to vector<16x1xf32>
    %cst_1 = arith.constant 2.560000e+02 : f32
    %3 = vector.broadcast %cst_1 : f32 to vector<16x1xf32>
    %4 = arith.divf %2, %3 : vector<16x1xf32>
    %5 = vector.broadcast %4 : vector<16x1xf32> to vector<16x256xf32>
    %6 = arith.subf %0, %5 : vector<16x256xf32>
    %7 = arith.mulf %6, %6 : vector<16x256xf32>
    %cst_2 = arith.constant dense<0.000000e+00> : vector<16xf32>
    %8 = vector.multi_reduction <add>, %7, %cst_2 [1] : vector<16x256xf32> to vector<16xf32>
    %9 = vector.shape_cast %8 : vector<16xf32> to vector<16x1xf32>
    %cst_3 = arith.constant 2.560000e+02 : f32
    %10 = vector.broadcast %cst_3 : f32 to vector<16x1xf32>
    %11 = arith.divf %9, %10 : vector<16x1xf32>
    %cst_4 = arith.constant 9.99999974E-6 : f32
    %12 = vector.broadcast %cst_4 : f32 to vector<16x1xf32>
    %13 = arith.addf %11, %12 : vector<16x1xf32>
    %14 = math.rsqrt %13 : vector<16x1xf32>
    %15 = vector.broadcast %14 : vector<16x1xf32> to vector<16x256xf32>
    %16 = arith.mulf %6, %15 : vector<16x256xf32>
    %c0_5 = arith.constant 0 : index
    %c0_6 = arith.constant 0 : index
    %17 = vector.load %arg2[%c0_5, %c0_6] : memref<1x256xf32, #tpu.memory_space<vmem>>, vector<1x256xf32>
    %18 = vector.broadcast %17 : vector<1x256xf32> to vector<16x256xf32>
    %19 = arith.mulf %16, %18 : vector<16x256xf32>
    %c0_7 = arith.constant 0 : index
    %c0_8 = arith.constant 0 : index
    %20 = vector.load %arg3[%c0_7, %c0_8] : memref<1x256xf32, #tpu.memory_space<vmem>>, vector<1x256xf32>
    %21 = vector.broadcast %20 : vector<1x256xf32> to vector<16x256xf32>
    %22 = arith.addf %19, %21 : vector<16x256xf32>
    %c0_9 = arith.constant 0 : index
    %c0_10 = arith.constant 0 : index
    %23 = vector.load %arg4[%c0_9, %c0_10] : memref<256x64xf32, #tpu.memory_space<vmem>>, vector<256x64xf32>
    %cst_11 = arith.constant dense<0.000000e+00> : vector<16x64xf32>
    %24 = tpu.matmul %22, %23, %cst_11 {dimension_numbers = #tpu.dot_dimension_numbers<[1], [0], [0], [1], [0, 0, 1, 1], [], []>} : vector<16x256xf32>, vector<256x64xf32>, vector<16x64xf32> -> vector<16x64xf32>
    %c0_12 = arith.constant 0 : index
    %c0_13 = arith.constant 0 : index
    %25 = vector.load %arg5[%c0_12, %c0_13] : memref<1x64xf32, #tpu.memory_space<vmem>>, vector<1x64xf32>
    %26 = vector.broadcast %25 : vector<1x64xf32> to vector<16x64xf32>
    %27 = arith.addf %24, %26 : vector<16x64xf32>
    %cst_14 = arith.constant 0.000000e+00 : f32
    %28 = vector.broadcast %cst_14 : f32 to vector<16x64xf32>
    %29 = arith.maximumf %27, %28 : vector<16x64xf32>
    %c0_15 = arith.constant 0 : index
    %c0_16 = arith.constant 0 : index
    %30 = vector.load %arg6[%c0_15, %c0_16] : memref<64x256xf32, #tpu.memory_space<vmem>>, vector<64x256xf32>
    %cst_17 = arith.constant dense<0.000000e+00> : vector<16x256xf32>
    %31 = tpu.matmul %29, %30, %cst_17 {dimension_numbers = #tpu.dot_dimension_numbers<[1], [0], [0], [1], [0, 0, 1, 1], [], []>} : vector<16x64xf32>, vector<64x256xf32>, vector<16x256xf32> -> vector<16x256xf32>
    %c0_18 = arith.constant 0 : index
    %c0_19 = arith.constant 0 : index
    %32 = vector.load %arg7[%c0_18, %c0_19] : memref<1x256xf32, #tpu.memory_space<vmem>>, vector<1x256xf32>
    %33 = vector.broadcast %32 : vector<1x256xf32> to vector<16x256xf32>
    %34 = arith.addf %31, %33 : vector<16x256xf32>
    %c0_20 = arith.constant 0 : index
    %c0_21 = arith.constant 0 : index
    %35 = vector.load %arg8[%c0_20, %c0_21] : memref<16x256xf32, #tpu.memory_space<vmem>>, vector<16x256xf32>
    tpu.vector_store %arg8[%c0_20, %c0_21], %34 {strides = array<i32>} : memref<16x256xf32, #tpu.memory_space<vmem>>, vector<16x256xf32>,
    return
  }
  func.func @transform_0(%arg0: i32) -> (i32, i32) {
    %c0_i32 = arith.constant 0 : i32
    %c0_i32_0 = arith.constant 0 : i32
    return %arg0, %c0_i32 : i32, i32
  }
  func.func @transform_1(%arg0: i32) -> (i32, i32) {
    %c0_i32 = arith.constant 0 : i32
    %c0_i32_0 = arith.constant 0 : i32
    %c0_i32_1 = arith.constant 0 : i32
    return %c0_i32, %c0_i32_0 : i32, i32
  }
  func.func @transform_2(%arg0: i32) -> (i32, i32) {
    %c0_i32 = arith.constant 0 : i32
    %c0_i32_0 = arith.constant 0 : i32
    %c0_i32_1 = arith.constant 0 : i32
    return %c0_i32, %c0_i32_0 : i32, i32
  }
  func.func @transform_3(%arg0: i32) -> (i32, i32) {
    %c0_i32 = arith.constant 0 : i32
    %c0_i32_0 = arith.constant 0 : i32
    %c0_i32_1 = arith.constant 0 : i32
    return %c0_i32, %c0_i32_0 : i32, i32
  }
  func.func @transform_4(%arg0: i32) -> (i32, i32) {
    %c0_i32 = arith.constant 0 : i32
    %c0_i32_0 = arith.constant 0 : i32
    %c0_i32_1 = arith.constant 0 : i32
    return %c0_i32, %c0_i32_0 : i32, i32
  }
  func.func @transform_5(%arg0: i32) -> (i32, i32) {
    %c0_i32 = arith.constant 0 : i32
    %c0_i32_0 = arith.constant 0 : i32
    %c0_i32_1 = arith.constant 0 : i32
    return %c0_i32, %c0_i32_0 : i32, i32
  }
  func.func @transform_6(%arg0: i32) -> (i32, i32) {
    %c0_i32 = arith.constant 0 : i32
    %c0_i32_0 = arith.constant 0 : i32
    %c0_i32_1 = arith.constant 0 : i32
    return %c0_i32, %c0_i32_0 : i32, i32
  }
  func.func @transform_7(%arg0: i32) -> (i32, i32) {
    %c0_i32 = arith.constant 0 : i32
    %c0_i32_0 = arith.constant 0 : i32
    return %arg0, %c0_i32 : i32, i32
  }
}

</mosaic_0001>

<bundles_post_ra>
// kernel: tpu_custom_call.1
= control target key start
LH: loop header
LB: loop body
LE: loop exit
PB: predicated region body
PF: predicated region fallthrough
CT: control target
= control target key end

     0   :  { %s709_s0 = inlined_call_operand.vmem [shape: f32[16,256], index: 0, kind: input, shape index: {}]   ;;  %s710_s1 = inlined_call_operand.vmem [shape: f32[1,256], index: 1, kind: input, shape index: {}]   ;;  %s711_s2 = inlined_call_operand.vmem [shape: f32[1,256], index: 2, kind: input, shape index: {}]   ;;  %s712_s3 = inlined_call_operand.vmem [shape: f32[256,64], index: 3, kind: input, shape index: {}]   ;;  %s713_s4 = inlined_call_operand.vmem [shape: f32[1,64], index: 4, kind: input, shape index: {}]   ;;  %s714_s5 = inlined_call_operand.vmem [shape: f32[64,256], index: 5, kind: input, shape index: {}]   ;;  %s715_s6 = inlined_call_operand.vmem [shape: f32[1,256], index: 6, kind: input, shape index: {}]   ;;  %s716_s7 = inlined_call_operand.hbm [shape: f32[16,256], index: 7, kind: output, shape index: {}]  }
   0x1   :  { %v27_v0 = vld [vmem:[%s709_s0] sm:$0xff]  ;;  %v28_v1 = vld [vmem:[%s709_s0 + $0x8] sm:$0xff]  ;;  %v29_v2 = vld [vmem:[%s709_s0 + $0x10] sm:$0xff] }
   0x2   :  { %v31_v3 = vadd.f32 %v28_v1, %v27_v0  ;;  %v30_v4 = vld [vmem:[%s709_s0 + $0x18] sm:$0xff] }
   0x3   :  { %12 = vsyncpa [#allocation3], 0  ;;  %v34_v5 = vadd.f32 %v30_v4, %v29_v2  ;;  %v112_v6 = vld [vmem:[%s712_s3 + $0x80] sm:$0xff]  ;;  %v113_v7 = vld [vmem:[%s712_s3 + $0x88] sm:$0xff]  ;;  %vm240_vm0 = vcmask 523264  }
   0x4   :  { %32 = vadd.xlane.f32.xlu0 %v31_v3  ;;  %v96_v8 = vld [vmem:[%s712_s3] sm:$0xff]  ;;  %v385_v9 = vpack.c.bf16 %v113_v7, %v112_v6  ;;  %v97_v10 = vld [vmem:[%s712_s3 + $0x8] sm:$0xff]  ;;  %v114_v11 = vld [vmem:[%s712_s3 + $0x90] sm:$0xff] }
   0x5   :  { %v115_v12 = vld [vmem:[%s712_s3 + $0x98] sm:$0xff]  ;;  %v387_v13 = vpack.c.bf16 %v97_v10, %v96_v8  ;;  %v98_v15 = vld [vmem:[%s712_s3 + $0x10] sm:$0xff]  ;;  %v116_v17 = vld [vmem:[%s712_s3 + $0xa0] sm:$0xff] }
   0x6   :  { %v389_v14 = vpack.c.bf16 %v115_v12, %v114_v11  ;;  %v99_v16 = vld [vmem:[%s712_s3 + $0x18] sm:$0xff]  ;;  %386 = vmatprep.subr.bf16.mxu0 %v385_v9  ;;  %v117_v18 = vld [vmem:[%s712_s3 + $0xa8] sm:$0xff]  ;;  %v100_v21 = vld [vmem:[%s712_s3 + $0x20] sm:$0xff] }
   0x7   :  { %388 = vmatpush3.bf16.msra.mxu0 %v387_v13  ;;  %v391_v19 = vpack.c.bf16 %v99_v16, %v98_v15  ;;  %v393_v20 = vpack.c.bf16 %v117_v18, %v116_v17  ;;  %v101_v22 = vld [vmem:[%s712_s3 + $0x28] sm:$0xff]  ;;  %v118_v38 = vld [vmem:[%s712_s3 + $0xb0] sm:$0xff]  ;;  %v119_v39 = vld [vmem:[%s712_s3 + $0xb8] sm:$0xff]  ;;  %v66_v18 = vlaneseq }
   0x8   :  { %35 = vadd.xlane.f32.xlu0 %v34_v5  ;;  %390 = vmatprep.subr.bf16.mxu0 %v389_v14  ;;  %v395_v23 = vpack.c.bf16 %v101_v22, %v100_v21  ;;  %v397_v40 = vpack.c.bf16 %v119_v39, %v118_v38  ;;  %v102_v41 = vld [vmem:[%s712_s3 + $0x30] sm:$0xff]  ;;  %v103_v42 = vld [vmem:[%s712_s3 + $0x38] sm:$0xff]  ;;  %v120_v44 = vld [vmem:[%s712_s3 + $0xc0] sm:$0xff] }
   0x9   :  { %v399_v43 = vpack.c.bf16 %v103_v42, %v102_v41  ;;  %v121_v45 = vld [vmem:[%s712_s3 + $0xc8] sm:$0xff]  ;;  %v104_v47 = vld [vmem:[%s712_s3 + $0x40] sm:$0xff]  ;;  %v122_v50 = vld [vmem:[%s712_s3 + $0xd0] sm:$0xff]  ;;  %v67_v22 = vshrl.u32 %v66_v18, 7 }
   0xa   :  { %v401_v46 = vpack.c.bf16 %v121_v45, %v120_v44  ;;  %v105_v48 = vld [vmem:[%s712_s3 + $0x48] sm:$0xff]  ;;  %v123_v51 = vld [vmem:[%s712_s3 + $0xd8] sm:$0xff]  ;;  %v106_v53 = vld [vmem:[%s712_s3 + $0x50] sm:$0xff] }
   0xb   :  { %392 = vmatpush3.bf16.msra.mxu0 %v391_v19  ;;  %v403_v49 = vpack.c.bf16 %v105_v48, %v104_v47  ;;  %v405_v52 = vpack.c.bf16 %v123_v51, %v122_v50  ;;  %v107_v54 = vld [vmem:[%s712_s3 + $0x58] sm:$0xff]  ;;  %v124_v55 = vld [vmem:[%s712_s3 + $0xe0] sm:$0xff]  ;;  %v125_v57 = vld [vmem:[%s712_s3 + $0xe8] sm:$0xff] }
   0xc   :  { %394 = vmatprep.subr.bf16.mxu0 %v393_v20  ;;  %v407_v56 = vpack.c.bf16 %v107_v54, %v106_v53  ;;  %v108_v58 = vld [vmem:[%s712_s3 + $0x60] sm:$0xff]  ;;  %v109_v59 = vld [vmem:[%s712_s3 + $0x68] sm:$0xff]  ;;  %v409_v60 = vpack.c.bf16 %v125_v57, %v124_v55  ;;  %v126_v61 = vld [vmem:[%s712_s3 + $0xf0] sm:$0xff] }
   0xd   :  { %v127_v62 = vld [vmem:[%s712_s3 + $0xf8] sm:$0xff]  ;;  %v411_v63 = vpack.c.bf16 %v109_v59, %v108_v58  ;;  %v212_v6 = vld [vmem:[%s714_s5] sm:$0xff]  ;;  %v214_v8 = vld [vmem:[%s714_s5 + $0x10] sm:$0xff]  ;;  %v465_v58 = vmov 0.0  }
   0xe   :  { %v215_v5 = vld [vmem:[%s714_s5 + $0x18] sm:$0xff]  ;;  %v217_v9 = vld [vmem:[%s714_s5 + $0x28] sm:$0xff]  ;;  %v419_v11 = vpack.c.bf16 %v214_v8, %v212_v6  ;;  %v216_v13 = vld [vmem:[%s714_s5 + $0x20] sm:$0xff]  ;;  %311 = vmatprep.mubr.f32.mxu1 %v465_v58 }
   0xf   :  { %396 = vmatpush3.bf16.msra.mxu0 %v395_v23  ;;  %v219_v10 = vld [vmem:[%s714_s5 + $0x38] sm:$0xff]  ;;  %v218_v14 = vld [vmem:[%s714_s5 + $0x30] sm:$0xff]  ;;  %v224_v55 = vld [vmem:[%s714_s5 + $0x60] sm:$0xff] }
  0x10   :  { %398 = vmatprep.subr.bf16.mxu0 %v397_v40  ;;  %v421_v12 = vpack.c.bf16 %v219_v10, %v217_v9  ;;  %v423_v15 = vpack.c.bf16 %v218_v14, %v216_v13  ;;  %v227_v53 = vld [vmem:[%s714_s5 + $0x78] sm:$0xff]  ;;  %v228_v6 = vld [vmem:[%s715_s6] sm:$0x3] }
  0x13   :  { %400 = vmatpush3.bf16.msra.mxu0 %v399_v43 }
  0x14   :  { %402 = vmatprep.subr.bf16.mxu0 %v401_v46 }
  0x17   :  { %404 = vmatpush3.bf16.msra.mxu0 %v403_v49 }
  0x18   :  { %406 = vmatprep.subr.bf16.mxu0 %v405_v52  ;;  %v225_v52 = vld [vmem:[%s714_s5 + $0x68] sm:$0xff] }
  0x19   :  { %v429_v54 = vpack.c.bf16 %v227_v53, %v225_v52 }
  0x1b   :  { %408 = vmatpush3.bf16.msra.mxu0 %v407_v56  ;;  %v226_v56 = vld [vmem:[%s714_s5 + $0x70] sm:$0xff] }
  0x1c   :  { %410 = vmatprep.subr.bf16.mxu0 %v409_v60  ;;  %v431_v57 = vpack.c.bf16 %v226_v56, %v224_v55  ;;  %v344_v60 = vld [vmem:[%s713_s4] ss:$0 sm:$0xff]  ;;  %s466_s4 = smov [#allocation2]  }
  0x1d   :  { %s333_s12 = sshll.u32 %s466_s4, 4  ;;  %s334_s12 = int_to_ptr.vmem [resolvable:$true] %s333_s12 }
  0x1e   :  { %s441_s13 = scalar_lea.vmem %s334_s12, 512  ;;  %p446_p1 = scmp.lt.s32.totalorder %s334_s12, %s334_s12 }
  0x1f   :  { %412 = vmatpush3.bf16.msra.mxu0 %v411_v63  ;;  %p442_p0 = scmp.ne.s32.totalorder %s334_s12, %s441_s13  ;;  %p447_p2 = scmp.lt.s32.totalorder %s441_s13, %s441_s13 }
  0x21   :  { %p448_p3 = por %p447_p2, %p446_p1 }
  0x23   :  { %p449_p4 = pnand %p448_p3, %p442_p0 }
  0x91   :  { %v33_v24 = vpop.xlane.xlu0 %32 }
  0x92   :  { %v38_v25 = vmul.f32 0.00390625, %v33_v24  ;;  %v68_v24 = vsub.s32 0, %v67_v22 }
  0x94   :  { %v557_v26 = vsub.f32 %v27_v0, %v38_v25  ;;  %v559_v27 = vsub.f32 %v28_v1, %v38_v25  ;;  %v413_v0 = vpack.c.bf16 %v127_v62, %v126_v61  ;;  %v110_v1 = vld [vmem:[%s712_s3 + $0x70] sm:$0xff]  ;;  %v72_v25 = vsub.s32 1, %v67_v22 }
  0x95   :  { %v36_v28 = vpop.xlane.xlu0 %35 }
  0x96   :  { %v39_v29 = vmul.f32 0.00390625, %v36_v28  ;;  %v44_v30 = vmul.f32 %v557_v26, %v557_v26  ;;  %v45_v31 = vmul.f32 %v559_v27, %v559_v27  ;;  %414 = vmatprep.subr.bf16.mxu0 %v413_v0  ;;  %v64_v28 = vld [vmem:[%s710_s1] sm:$0x3]  ;;  %v237_v8 = vrot.slane %v228_v6, %v72_v25 }
  0x98   :  { %v565_v32 = vsub.f32 %v29_v2, %v39_v29  ;;  %v567_v33 = vsub.f32 %v30_v4, %v39_v29  ;;  %v48_v34 = vadd.f32 %v45_v31, %v44_v30  ;;  %v111_v2 = vld [vmem:[%s712_s3 + $0x78] sm:$0xff]  ;;  %v213_v4 = vld [vmem:[%s714_s5 + $0x8] sm:$0xff]  ;;  %v80_v29 = vld [vmem:[%s711_s2] sm:$0x3]  ;;  %v69_v30 = vrot.slane %v64_v28, %v68_v24 }
  0x99   :  { %v415_v3 = vpack.c.bf16 %v111_v2, %v110_v1  ;;  %v417_v7 = vpack.c.bf16 %v215_v5, %v213_v4  ;;  %v73_v31 = vrot.slane %v64_v28, %v72_v25 }
  0x9a   :  { %49 = vadd.xlane.f32.xlu1 %v48_v34  ;;  %v46_v35 = vmul.f32 %v565_v32, %v565_v32  ;;  %v47_v36 = vmul.f32 %v567_v33, %v567_v33 }
  0x9b   :  { %416 = vmatpush3.bf16.msra.mxu0 %v415_v3  ;;  %418 = vmatprep.subr.bf16.mxu1 %v417_v7  ;;  %v233_v7 = vrot.slane %v228_v6, %v68_v24 }
  0x9c   :  { %v51_v37 = vadd.f32 %v47_v36, %v46_v35  ;;  %420 = vmatpush1.bf16.msra.mxu1 %v419_v11  ;;  %v85_v36 = vrot.slane %v80_v29, %v68_v24 }
  0x9d   :  { %422 = vmatprep.subr.bf16.mxu1 %v421_v12 }
  0x9e   :  { %52 = vadd.xlane.f32.xlu1 %v51_v37  ;;  %v89_v37 = vrot.slane %v80_v29, %v72_v25 }
  0xa0   :  { %424 = vmatpush1.bf16.msra.mxu1 %v423_v15 }
 0x127   :  { %v50_v16 = vpop.xlane.xlu1 %49 }
 0x128   :  { %v54_v17 = vmul.f32 0.00390625, %v50_v16 }
 0x12a   :  { %v56_v19 = vadd.f32 1e-05, %v54_v17 }
 0x12b   :  { %v53_v20 = vpop.xlane.xlu1 %52 }
 0x12c   :  { %437 = vrsqrt.f32 %v56_v19  ;;  %v55_v21 = vmul.f32 0.00390625, %v53_v20 }
 0x12e   :  { %v57_v23 = vadd.f32 1e-05, %v55_v21 }
 0x130   :  { %439 = vrsqrt.f32 %v57_v23 }
 0x136   :  { %v438_v34 = vpop.eup %437 }
 0x137   :  { %v61_v35 = vmul.f32 %v438_v34, %v559_v27  ;;  %v60_v38 = vmul.f32 %v438_v34, %v557_v26  ;;  %v221_v26 = vld [vmem:[%s714_s5 + $0x48] sm:$0xff]  ;;  %v223_v27 = vld [vmem:[%s714_s5 + $0x58] sm:$0xff] }
 0x138   :  { %v425_v50 = vpack.c.bf16 %v223_v27, %v221_v26 }
 0x139   :  { %v77_v39 = vmul.f32 %v73_v31, %v61_v35  ;;  %v76_v40 = vmul.f32 %v69_v30, %v60_v38 }
 0x13a   :  { %v440_v41 = vpop.eup %439  ;;  %426 = vmatprep.subr.bf16.mxu1 %v425_v50 }
 0x13b   :  { %v93_v42 = vadd.f32 %v89_v37, %v77_v39  ;;  %v92_v43 = vadd.f32 %v85_v36, %v76_v40  ;;  %v63_v44 = vmul.f32 %v440_v41, %v567_v33  ;;  %v62_v45 = vmul.f32 %v440_v41, %v565_v32  ;;  %v220_v32 = vld [vmem:[%s714_s5 + $0x40] sm:$0xff]  ;;  %v222_v33 = vld [vmem:[%s714_s5 + $0x50] sm:$0xff] }
 0x13c   :  { %v427_v51 = vpack.c.bf16 %v222_v33, %v220_v32 }
 0x13d   :  { %199 = vmatprep.mubr.f32.mxu0 %v93_v42  ;;  %v79_v46 = vmul.f32 %v73_v31, %v63_v44  ;;  %v78_v47 = vmul.f32 %v69_v30, %v62_v45 }
 0x13e   :  { %200 = vmatmul.mubr.f32.vlgmr.msra.gmra.mrb[0].mxu0 %v92_v43  ;;  %428 = vmatpush1.bf16.msra.mxu1 %v427_v51 }
 0x13f   :  { %v95_v48 = vadd.f32 %v89_v37, %v79_v46  ;;  %v94_v49 = vadd.f32 %v85_v36, %v78_v47  ;;  %430 = vmatprep.subr.bf16.mxu1 %v429_v54 }
 0x141   :  { %204 = vmatprep.mubr.f32.mxu0 %v95_v48 }
 0x142   :  { %205 = vmatmul.mubr.f32.gmra.mrb[2].mxu0 %v94_v49  ;;  %432 = vmatpush1.bf16.msra.mxu1 %v431_v57 }
 0x211   :  { %v379_v59 = vpop.f32.mrb[0].mxu0 }
 0x212   :  { %v380_v61 = vpop.f32.mrb[1].mxu0 }
 0x213   :  { %v381_v62 = vadd.f32 %v380_v61, %v379_v59 }
 0x215   :  { %v202_v63 = vadd.f32 %v381_v62, %v344_v60  ;;  %v382_v0 = vpop.f32.mrb[2].mxu0 }
 0x216   :  { %v383_v1 = vpop.f32.mrb[3].mxu0 }
 0x217   :  { %v210_v2 = vmax.f32 %v202_v63, 0.0  ;;  %v384_v3 = vadd.f32 %v383_v1, %v382_v0 }
 0x219   :  { %v207_v4 = vadd.f32 %v384_v3, %v344_v60  ;;  %345 = vmatmul.mubr.msk.f32.vlgmr.msra.gmra.mrb[0].mxu1 %vm240_vm0, %v210_v2 }
 0x21a   :  { %317 = vmatprep.mubr.f32.mxu1 %v465_v58 }
 0x21b   :  { %v211_v5 = vmax.f32 %v207_v4, 0.0 }
 0x21d   :  { %346 = vmatmul.mubr.msk.f32.gmra.mrb[2].mxu1 %vm240_vm0, %v211_v5 }
 0x2ec   :  { %v313_v9 = vpop.f32.mrb[0].mxu1 }
 0x2ed   :  { %v314_v10 = vadd.f32 %v313_v9, %v233_v7  ;;  %v315_v11 = vpop.f32.mrb[1].mxu1 }
 0x2ee   :  { %v316_v12 = vadd.f32 %v315_v11, %v237_v8 }
 0x2ef   :  { %324 = vst [vmem:[#allocation2] sm:$0xff] %v314_v10 }
 0x2f0   :  { %325 = vst [vmem:[#allocation2 + $0x8] sm:$0xff] %v316_v12  ;;  %v319_v13 = vpop.f32.mrb[2].mxu1 }
 0x2f1   :  { %v320_v14 = vadd.f32 %v319_v13, %v233_v7  ;;  %v321_v15 = vpop.f32.mrb[3].mxu1 }
 0x2f2   :  { %v322_v16 = vadd.f32 %v321_v15, %v237_v8 }
 0x2f3   :  { %326 = vst [vmem:[#allocation2 + $0x10] sm:$0xff] %v320_v14 }
 0x2f4   :  { %327 = vst [vmem:[#allocation2 + $0x18] sm:$0xff] %v322_v16 }
 0x2f5   :  { %452 = shalt.err (!%p449_p4)
}
 0x2f6   :  { %s453_s15 = scalar_lea.hbm %s716_s7, 512 }
 0x2f7   :  { %p454_p5 = scmp.ne.s32.totalorder %s716_s7, %s453_s15  ;;  %p457_p6 = scmp.lt.u32.totalorder %s453_s15, %s716_s7 }
 0x2f9   :  { %p459_p7 = pnand %p457_p6, %p454_p5 }
 0x2fb   :  { %462 = shalt.err (!%p459_p7)
}
 0x2fc   :  { %s467_s1 = smov 256   ;;  %s468_s2 = smov 16  }
 0x2fd   :  { %339 = dma.vmem_to_hbm [thread:$0]  %s334_s12, 512, %s716_s7, [#allocation3], %s467_s1, %s467_s1, %s468_s2  }
 0x2fe   :  { %463 = dma.done.wait [#allocation3], 512  }
 0x2ff   :  { %464 = vsyncadd [#allocation3], 4294966784 }
 0x300   :  { %343 = vsyncpa [#allocation3], 1 }

</bundles_post_ra>
